<compile_context>
chip_gen: v7x
topology: tpu7x:2x2x1
jax: 0.10.0
libtpu: 0.0.40
codegen_flags: <defaults>
</compile_context>

<pallas_src>
import functools

import jax
import jax.numpy as jnp
from jax.experimental import pallas as pl
from jax.experimental.pallas import tpu as pltpu


def _round_up(x, m):
    return ((x + m - 1) // m) * m


def _vmem_capacity_bytes():
    try:
        return int(pltpu.get_tpu_info().vmem_capacity_bytes)
    except Exception:
        return 128 * 1024 * 1024  # v5e/v6e default; v7x has 64 MiB per TC


def _pick_tile(dim, target, align):
    """Largest multiple of `align` that divides `dim` and is <= ~target; else `dim`."""
    if dim % align != 0 or dim <= align:
        return dim
    t = min(_round_up(target, align), dim)
    t = (t // align) * align
    while t >= align:
        if dim % t == 0:
            return t
        t -= align
    return dim


# ---------------------------------------------------------------------------
# Kernel
# ---------------------------------------------------------------------------
def _mlp_kernel(x_ref, wgu_ref, wd_ref, o_ref, *acc_scratch):
    # x_ref:   (tm, H)       token tile (resident across the I/k axis)
    # wgu_ref: (H, 2*ti)     fused [gate_proj.T | up_proj.T] slab for this k step
    # wd_ref:  (ti, H)       down_proj.T tile
    # o_ref:   (tm, H)       output tile (resident across the I axis)
    # acc_scratch: optional (tm, H) f32 scratch; omitted when o_ref is already f32
    acc_ref = acc_scratch[0] if acc_scratch else o_ref
    k = pl.program_id(1)

    @pl.when(k == 0)
    def _():
        acc_ref[...] = jnp.zeros_like(acc_ref)

    # Cast activations to the (possibly lower-precision) weight compute dtype in VMEM.
    x = x_ref[...].astype(wgu_ref.dtype)

    # One MXU-filling dot with N = 2*ti produces gate|up for this I tile.
    gu = jnp.dot(x, wgu_ref[...], preferred_element_type=jnp.float32)
    ti = wd_ref.shape[0]
    gate = gu[:, :ti]
    up = gu[:, ti:]

    # SiLU(gate) = gate * sigmoid(gate); exp and approx reciprocal both run on the EUP.
    act = gate * pl.reciprocal(1.0 + jnp.exp(-gate), approx=True)
    hidden = (up * act).astype(wd_ref.dtype)  # QuantMul (identity fake-quant)

    acc_ref[...] += jnp.dot(hidden, wd_ref[...], preferred_element_type=jnp.float32)

    if acc_scratch:  # lower-precision output: single cast + store on the last k step
        @pl.when(k == pl.num_programs(1) - 1)
        def _():
            o_ref[...] = acc_ref[...].astype(o_ref.dtype)


@functools.partial(jax.jit, static_argnames=("tm", "ti"))
def _quant_mlp_flat(x2d, w_gu, w_dn, *, tm, ti):
    M, H = x2d.shape
    kt = w_gu.shape[0]
    out_dtype = x2d.dtype
    use_scratch = out_dtype != jnp.float32  # f32 outputs accumulate directly in o_ref

    decode_shaped = M <= 8
    nbuf = 3 if decode_shaped else 2
    wbytes = jnp.dtype(w_gu.dtype).itemsize
    xbytes = jnp.dtype(x2d.dtype).itemsize
    need = (2 * tm * H * xbytes                      # double-buffered x tile
            + 2 * tm * H * jnp.dtype(out_dtype).itemsize  # double-buffered out tile
            + nbuf * 3 * H * ti * wbytes             # gate|up (2*ti) + down (ti) tiles
            + (tm * H * 4 if use_scratch else 0))
    cap = _vmem_capacity_bytes()
    vmem_limit = int(min(max(need * 5 // 4 + (8 << 20), 32 << 20), cap))

    wspec_kwargs = dict(pipeline_mode=pl.Buffered(3)) if decode_shaped else {}
    in_specs = [
        pl.BlockSpec((tm, H), lambda i, k: (i, 0)),                          # x tile
        pl.BlockSpec((None, H, 2 * ti), lambda i, k: (k, 0, 0), **wspec_kwargs),
        pl.BlockSpec((ti, H), lambda i, k: (k, 0), **wspec_kwargs),
    ]
    scratch_shapes = [pltpu.VMEM((tm, H), jnp.float32)] if use_scratch else []

    return pl.pallas_call(
        _mlp_kernel,
        out_shape=jax.ShapeDtypeStruct((M, H), out_dtype),
        grid_spec=pltpu.PrefetchScalarGridSpec(
            num_scalar_prefetch=0,
            # Partial last M tile is allowed: M is not a contraction dim, so garbage
            # rows only touch output rows whose write-back is clipped.
            grid=(pl.cdiv(M, tm), kt),
            in_specs=in_specs,
            out_specs=pl.BlockSpec((tm, H), lambda i, k: (i, 0)),
            scratch_shapes=scratch_shapes,
        ),
        compiler_params=pltpu.CompilerParams(
            dimension_semantics=("parallel", "arbitrary"),
            vmem_limit_bytes=vmem_limit,
        ),
    )(x2d, w_gu, w_dn)


# ---------------------------------------------------------------------------
# One-time (load-time) weight packing
# ---------------------------------------------------------------------------
def _pack_weights(w_gate, w_up, w_down, compute_dtype=None):
    """w_gate/w_up: (I, H) (nn.Linear weight layout), w_down: (H, I).

    Returns:
      w_gu: (I//ti, H, 2*ti) -- per-k-step contiguous [gate.T | up.T] slabs
      w_dn: (I, H)           -- down_proj.T
    """
    I, H = w_gate.shape
    dt = jnp.dtype(compute_dtype) if compute_dtype is not None else jnp.dtype(w_gate.dtype)
    wbytes = dt.itemsize

    # I-tile: ~48 MiB double-buffered weight budget (capped by chip VMEM), 256-aligned
    # where possible (full 256-wide MXU on v6e/v7x), 128 otherwise.
    cap = _vmem_capacity_bytes()
    budget = min(48 << 20, (cap * 3) // 8)
    align = 256 if I % 256 == 0 else 128
    ti_target = max(align, budget // (6 * H * wbytes))
    ti = _pick_tile(I, ti_target, align)
    kt = I // ti

    wg_t = w_gate.T.astype(dt)  # (H, I)
    wu_t = w_up.T.astype(dt)
    w_gu = jnp.concatenate(
        [wg_t.reshape(H, kt, ti).transpose(1, 0, 2),
         wu_t.reshape(H, kt, ti).transpose(1, 0, 2)],
        axis=-1)                # (kt, H, 2*ti)
    w_dn = w_down.T.astype(dt)  # (I, H)
    return {"w_gu": w_gu, "w_dn": w_dn, "ti": ti, "hidden": H, "inter": I}


def pack_quant_mlp_params(params, compute_dtype=None):
    """Pack both fp and w8 weight sets once at load time (compute_dtype=bf16 recommended
    on v6e/v7x; accumulation stays f32 inside the kernel)."""
    return {
        "fp": _pack_weights(params["gate"], params["up"], params["down"], compute_dtype),
        "w8": _pack_weights(params["w8_gate"], params["w8_up"], params["w8_down"], compute_dtype),
    }


# ---------------------------------------------------------------------------
# Per-call wrapper (no weight work, no pad/slice copies)
# ---------------------------------------------------------------------------
def quant_mlp(x, packed, w8=False):
    """x: [batch, seq, hidden] (or [tokens, hidden]); packed: pack_quant_mlp_params(...)."""
    if x.shape[0] == 0:
        return x
    p = packed["w8"] if w8 else packed["fp"]
    orig_shape = x.shape
    H = orig_shape[-1]
    x2d = x.reshape(-1, H)
    M = x2d.shape[0]
    ti = p["ti"]

    # M tile scales with M (weights are re-streamed once per M tile), capped by VMEM.
    if M >= 512:
        tm = 512
    elif M >= 256:
        tm = 256
    else:
        tm = _round_up(M, 8)

    xbytes = jnp.dtype(x2d.dtype).itemsize
    wbytes = jnp.dtype(p["w_gu"].dtype).itemsize
    use_scratch = x2d.dtype != jnp.float32
    cap = _vmem_capacity_bytes()

    def vmem_need(t):
        return (6 * H * ti * wbytes + 4 * t * H * xbytes
                + (t * H * 4 if use_scratch else 0))

    while tm > 8 and vmem_need(tm) > (cap * 7) // 8:
        tm = max(8, _round_up(tm // 2, 8))

    out = _quant_mlp_flat(x2d, p["w_gu"], p["w_dn"], tm=tm, ti=ti)
    return out.reshape(orig_shape)


# ---------------------------------------------------------------------------
# Test harness
# ---------------------------------------------------------------------------
def _init_params(key, hidden, intermediate, dtype=jnp.float32):
    kg, ku, kd = jax.random.split(key, 3)
    scale_h = 1.0 / jnp.sqrt(hidden)
    scale_i = 1.0 / jnp.sqrt(intermediate)
    w_gate = jax.random.uniform(kg, (intermediate, hidden), dtype, -scale_h, scale_h)
    w_up = jax.random.uniform(ku, (intermediate, hidden), dtype, -scale_h, scale_h)
    w_down = jax.random.uniform(kd, (hidden, intermediate), dtype, -scale_i, scale_i)

    # Synthetic "w8" weights: symmetric per-tensor fake-quant to 8 bits (dequantized).
    def fake_w8(w):
        s = jnp.max(jnp.abs(w)) / 127.0
        return (jnp.clip(jnp.round(w / s), -128, 127) * s).astype(dtype)

    return {
        "gate": w_gate, "up": w_up, "down": w_down,
        "w8_gate": fake_w8(w_gate), "w8_up": fake_w8(w_up), "w8_down": fake_w8(w_down),
    }


def _reference(x2d, w_gate, w_up, w_down):
    g = x2d @ w_gate.T
    u = x2d @ w_up.T
    a = g * jax.nn.sigmoid(g)
    return (u * a) @ w_down.T


if __name__ == "__main__":
    batch, seq, hidden, intermediate = 2, 8, 32, 64
    key = jax.random.PRNGKey(0)
    kx, kp = jax.random.split(key)
    x = jax.random.normal(kx, (batch, seq, hidden), jnp.float32)
    params = _init_params(kp, hidden, intermediate)

    packed = pack_quant_mlp_params(params)                      # load-time packing (f32)
    packed_bf16 = pack_quant_mlp_params(params, jnp.bfloat16)   # bf16-compute variant

    out = jax.block_until_ready(quant_mlp(x, packed, w8=False))
    out_w8 = jax.block_until_ready(quant_mlp(x, packed, w8=True))

    x2d = x.reshape(-1, hidden)
    ref = _reference(x2d, params["gate"], params["up"],
                     params["down"]).reshape(x.shape)
    ref_w8 = _reference(x2d, params["w8_gate"], params["w8_up"],
                        params["w8_down"]).reshape(x.shape)

    assert out.shape == x.shape and out.dtype == x.dtype
    assert out_w8.shape == x.shape
    # Tolerance accounts for the approx (EUP) reciprocal in the sigmoid.
    assert jnp.allclose(out, ref, atol=1e-2, rtol=1e-2), "fp mismatch vs reference"
    assert jnp.allclose(out_w8, ref_w8, atol=1e-2, rtol=1e-2), "w8 mismatch vs reference"

    # Mixed precision: f32 activations + bf16 weights (recommended on v6e/v7x) keeps
    # f32 output/accumulation; fully-bf16 activations exercise the f32 scratch path.
    out_mixed = jax.block_until_ready(quant_mlp(x, packed_bf16, w8=False))
    assert out_mixed.dtype == jnp.float32
    assert jnp.allclose(out_mixed, ref, atol=5e-2, rtol=5e-2), "bf16-weight mismatch"

    out_bf16 = jax.block_until_ready(quant_mlp(x.astype(jnp.bfloat16), packed_bf16))
    assert out_bf16.dtype == jnp.bfloat16
    assert jnp.allclose(out_bf16.astype(jnp.float32), ref, atol=1e-1, rtol=1e-1), \
        "bf16 activation mismatch"

    print("KERNEL_OK")
</pallas_src>

<mosaic_0001>
module attributes {stable_mosaic.version = 11 : i64} {
  func.func @_mlp_kernel(%arg0: i32, %arg1: i32, %arg2: memref<16x32xf32, #tpu.memory_space<vmem>>, %arg3: memref<1x32x128xf32, #tpu.memory_space<vmem>>, %arg4: memref<64x32xf32, #tpu.memory_space<vmem>>, %arg5: memref<16x32xf32, #tpu.memory_space<vmem>>) attributes {dimension_semantics = [#tpu.dimension_semantics<parallel>, #tpu.dimension_semantics<arbitrary>], iteration_bounds = array<i64: 1, 1>, scalar_prefetch = 0 : i64, scratch_operands = 0 : i64, tpu.core_type = #tpu.core_type<tc>, window_params = [{transform_indices = @transform_0, window_bounds = array<i64: 16, 32>}, {transform_indices = @transform_1, window_bounds = array<i64: 1, 32, 128>}, {transform_indices = @transform_2, window_bounds = array<i64: 64, 32>}, {transform_indices = @transform_3, window_bounds = array<i64: 16, 32>}]} {
    %c0_i32 = arith.constant 0 : i32
    %0 = arith.cmpi eq, %arg1, %c0_i32 : i32
    %1 = arith.extui %0 : i1 to i32
    %c0_i32_0 = arith.constant 0 : i32
    %2 = arith.cmpi ne, %1, %c0_i32_0 : i32
    scf.if %2 {
      %cst_14 = arith.constant 0.000000e+00 : f32
      %22 = vector.broadcast %cst_14 : f32 to vector<16x32xf32>
      %c0_15 = arith.constant 0 : index
      %c0_16 = arith.constant 0 : index
      %23 = vector.load %arg5[%c0_15, %c0_16] : memref<16x32xf32, #tpu.memory_space<vmem>>, vector<16x32xf32>
      tpu.vector_store %arg5[%c0_15, %c0_16], %22 {strides = array<i32>} : memref<16x32xf32, #tpu.memory_space<vmem>>, vector<16x32xf32>,
    } else {
    }
    %c0 = arith.constant 0 : index
    %c0_1 = arith.constant 0 : index
    %3 = vector.load %arg2[%c0, %c0_1] : memref<16x32xf32, #tpu.memory_space<vmem>>, vector<16x32xf32>
    %c0_2 = arith.constant 0 : index
    %c0_3 = arith.constant 0 : index
    %c0_4 = arith.constant 0 : index
    %4 = vector.load %arg3[%c0_2, %c0_3, %c0_4] : memref<1x32x128xf32, #tpu.memory_space<vmem>>, vector<1x32x128xf32>
    %5 = vector.shape_cast %4 : vector<1x32x128xf32> to vector<32x128xf32>
    %cst = arith.constant dense<0.000000e+00> : vector<16x128xf32>
    %6 = tpu.matmul %3, %5, %cst {dimension_numbers = #tpu.dot_dimension_numbers<[1], [0], [0], [1], [0, 0, 1, 1], [], []>} : vector<16x32xf32>, vector<32x128xf32>, vector<16x128xf32> -> vector<16x128xf32>
    %7 = vector.extract_strided_slice %6 {offsets = [0, 0], sizes = [16, 64], strides = [1, 1]} : vector<16x128xf32> to vector<16x64xf32>
    %8 = vector.extract_strided_slice %6 {offsets = [0, 64], sizes = [16, 64], strides = [1, 1]} : vector<16x128xf32> to vector<16x64xf32>
    %cst_5 = arith.constant 0.000000e+00 : f32
    %9 = vector.broadcast %cst_5 : f32 to vector<16x64xf32>
    %10 = arith.subf %9, %7 : vector<16x64xf32>
    %11 = math.exp %10 : vector<16x64xf32>
    %cst_6 = arith.constant 1.000000e+00 : f32
    %12 = vector.broadcast %cst_6 : f32 to vector<16x64xf32>
    %13 = arith.addf %12, %11 : vector<16x64xf32>
    %14 = tpu.reciprocal %13 {approx = true} : vector<16x64xf32> -> vector<16x64xf32>
    %15 = arith.mulf %7, %14 : vector<16x64xf32>
    %16 = arith.mulf %8, %15 : vector<16x64xf32>
    %c0_7 = arith.constant 0 : index
    %c0_8 = arith.constant 0 : index
    %17 = vector.load %arg5[%c0_7, %c0_8] : memref<16x32xf32, #tpu.memory_space<vmem>>, vector<16x32xf32>
    %c0_9 = arith.constant 0 : index
    %c0_10 = arith.constant 0 : index
    %18 = vector.load %arg4[%c0_9, %c0_10] : memref<64x32xf32, #tpu.memory_space<vmem>>, vector<64x32xf32>
    %cst_11 = arith.constant dense<0.000000e+00> : vector<16x32xf32>
    %19 = tpu.matmul %16, %18, %cst_11 {dimension_numbers = #tpu.dot_dimension_numbers<[1], [0], [0], [1], [0, 0, 1, 1], [], []>} : vector<16x64xf32>, vector<64x32xf32>, vector<16x32xf32> -> vector<16x32xf32>
    %20 = arith.addf %17, %19 : vector<16x32xf32>
    %c0_12 = arith.constant 0 : index
    %c0_13 = arith.constant 0 : index
    %21 = vector.load %arg5[%c0_12, %c0_13] : memref<16x32xf32, #tpu.memory_space<vmem>>, vector<16x32xf32>
    tpu.vector_store %arg5[%c0_12, %c0_13], %20 {strides = array<i32>} : memref<16x32xf32, #tpu.memory_space<vmem>>, vector<16x32xf32>,
    return
  }
  func.func @transform_0(%arg0: i32, %arg1: i32) -> (i32, i32) {
    %c0_i32 = arith.constant 0 : i32
    %c0_i32_0 = arith.constant 0 : i32
    return %arg0, %c0_i32 : i32, i32
  }
  func.func @transform_1(%arg0: i32, %arg1: i32) -> (i32, i32, i32) {
    %c0_i32 = arith.constant 0 : i32
    %c0_i32_0 = arith.constant 0 : i32
    %c0_i32_1 = arith.constant 0 : i32
    return %arg1, %c0_i32, %c0_i32_0 : i32, i32, i32
  }
  func.func @transform_2(%arg0: i32, %arg1: i32) -> (i32, i32) {
    %c0_i32 = arith.constant 0 : i32
    %c0_i32_0 = arith.constant 0 : i32
    return %arg1, %c0_i32 : i32, i32
  }
  func.func @transform_3(%arg0: i32, %arg1: i32) -> (i32, i32) {
    %c0_i32 = arith.constant 0 : i32
    %c0_i32_0 = arith.constant 0 : i32
    return %arg0, %c0_i32 : i32, i32
  }
}

</mosaic_0001>

<bundles_post_ra>
// kernel: _quant_mlp_flat.1
= control target key start
LH: loop header
LB: loop body
LE: loop exit
PB: predicated region body
PF: predicated region fallthrough
CT: control target
= control target key end

     0   :  { %vm19_vm0 = vcmask 261120   ;;  %s444_s0 = inlined_call_operand.vmem [shape: f32[16,32], index: 0, kind: input, shape index: {}]   ;;  %s445_s1 = inlined_call_operand.vmem [shape: f32[1,32,128], index: 1, kind: input, shape index: {}]   ;;  %s446_s2 = inlined_call_operand.vmem [shape: f32[64,32], index: 2, kind: input, shape index: {}]   ;;  %s447_s3 = inlined_call_operand.hbm [shape: f32[16,32], index: 3, kind: output, shape index: {}]  }
   0x1   :  { %v24_v0 = vld [vmem:[%s445_s1] sm:$0xff]  ;;  %v25_v1 = vld [vmem:[%s445_s1 + $0x8] sm:$0xff]  ;;  %v26_v2 = vld [vmem:[%s445_s1 + $0x10] sm:$0xff] }
   0x2   :  { %v298_v3 = vpack.c.bf16 %v25_v1, %v24_v0  ;;  %v27_v4 = vld [vmem:[%s445_s1 + $0x18] sm:$0xff]  ;;  %v22_v5 = vld [vmem:[%s444_s0] sm:$0xff] }
   0x3   :  { %v302_v6 = vpack.c.bf16 %v27_v4, %v26_v2  ;;  %276 = vmatprep.mubr.msk.f32.mxu0 %vm19_vm0, %v22_v5 }
   0x4   :  { %8 = vsyncpa [#allocation3], 0  ;;  %299 = vmatprep.subr.bf16.mxu0 %v298_v3  ;;  %v23_v7 = vld [vmem:[%s444_s0 + $0x8] sm:$0xff]  ;;  %v134_v18 = vld [vmem:[%s446_s2] sm:$0xff]  ;;  %s359_s7 = smov 64   ;;  %v360_v34 = vmov 0.0  }
   0x5   :  { %301 = vmatpush3.bf16.msra.mxu0 %v298_v3  ;;  %v135_v19 = vld [vmem:[%s446_s2 + $0x8] sm:$0xff]  ;;  %v136_v20 = vld [vmem:[%s446_s2 + $0x10] sm:$0xff]  ;;  %v137_v22 = vld [vmem:[%s446_s2 + $0x18] sm:$0xff]  ;;  %21 = vst.msk [vmem:[#allocation2 + $0x8] sm:$0xff] %vm19_vm0, %v360_v34  ;;  %vm148_vm1 = vcmask 523264  }
   0x6   :  { %303 = vmatprep.subr.bf16.mxu0 %v302_v6  ;;  %v306_v21 = vpack.c.bf16 %v135_v19, %v134_v18  ;;  %v310_v23 = vpack.c.bf16 %v137_v22, %v136_v20  ;;  %v138_v24 = vld [vmem:[%s446_s2 + $0x20] sm:$0xff]  ;;  %v139_v25 = vld [vmem:[%s446_s2 + $0x28] sm:$0xff]  ;;  %v140_v31 = vld [vmem:[%s446_s2 + $0x30] sm:$0xff]  ;;  %20 = vst.msk [vmem:[#allocation2] sm:$0xff] %vm19_vm0, %v360_v34 }
   0x7   :  { %v314_v28 = vpack.c.bf16 %v139_v25, %v138_v24  ;;  %v141_v32 = vld [vmem:[%s446_s2 + $0x38] sm:$0xff]  ;;  %s361_s2 = smov [#allocation2]  }
   0x8   :  { %307 = vmatprep.subr.bf16.mxu1 %v306_v21  ;;  %v318_v33 = vpack.c.bf16 %v141_v32, %v140_v31  ;;  %s237_s12 = sshll.u32 %s361_s2, 4  ;;  %s238_s12 = int_to_ptr.vmem [resolvable:$true] %s237_s12 }
   0x9   :  { %305 = vmatpush3.bf16.msra.mxu0 %v302_v6  ;;  %309 = vmatpush3.bf16.msra.mxu1 %v306_v21  ;;  %s335_s13 = scalar_lea.vmem %s238_s12, 256  ;;  %p340_p1 = scmp.lt.s32.totalorder %s238_s12, %s238_s12 }
   0xa   :  { %311 = vmatprep.subr.bf16.mxu1 %v310_v23  ;;  %p336_p0 = scmp.ne.s32.totalorder %s238_s12, %s335_s13  ;;  %p341_p2 = scmp.lt.s32.totalorder %s335_s13, %s335_s13 }
   0xc   :  { %277 = vmatmul.mubr.msk.f32.vlgmr.msra.gmra.mrb[0].mxu0 %vm19_vm0, %v23_v7  ;;  %v133_v41 = vld [vmem:[#allocation2 + $0x8] sm:$0xff]  ;;  %p342_p3 = por %p341_p2, %p340_p1 }
   0xd   :  { %313 = vmatpush3.bf16.msra.mxu1 %v310_v23  ;;  %v132_v42 = vld [vmem:[#allocation2] sm:$0xff] }
   0xe   :  { %315 = vmatprep.subr.bf16.mxu1 %v314_v28  ;;  %p343_p4 = pnand %p342_p3, %p336_p0 }
  0x11   :  { %317 = vmatpush3.bf16.msra.mxu1 %v314_v28 }
  0x12   :  { %319 = vmatprep.subr.bf16.mxu1 %v318_v33 }
  0x15   :  { %321 = vmatpush3.bf16.msra.mxu1 %v318_v33 }
  0xdf   :  { %v278_v8 = vpop.f32.mrb[0].mxu0 }
  0xe0   :  { %v111_v9 = vsub.f32 0.0, %v278_v8  ;;  %v101_v10 = vpop.f32.mrb[1].mxu0 }
  0xe1   :  { %v110_v11 = vsub.f32 0.0, %v101_v10 }
  0xe2   :  { %v114_v12 = vmul.f32 1.442695, %v111_v9 }
  0xe3   :  { %v112_v13 = vmul.f32 1.442695, %v110_v11 }
  0xe4   :  { %327 = vpow2.f32 %v114_v12 }
  0xe5   :  { %329 = vpow2.f32 %v112_v13 }
  0xee   :  { %v328_v14 = vpop.eup %327 }
  0xef   :  { %v330_v15 = vpop.eup %329  ;;  %v117_v16 = vadd.f32 1.0, %v328_v14 }
  0xf0   :  { %v116_v17 = vadd.f32 1.0, %v330_v15 }
  0xf2   :  { %331 = vrcp.f32 %v116_v17 }
  0xf3   :  { %333 = vrcp.f32 %v117_v16 }
  0xfc   :  { %v332_v26 = vpop.eup %331 }
  0xfd   :  { %v120_v27 = vmul.f32 %v332_v26, %v101_v10  ;;  %v334_v29 = vpop.eup %333 }
  0xfe   :  { %v121_v30 = vmul.f32 %v334_v29, %v278_v8 }
  0xff   :  { %124 = vrot.lane.b32.xlu0 %v120_v27, %s359_s7 }
 0x103   :  { %126 = vrot.lane.b32.xlu0 %v121_v30, %s359_s7 }
 0x171   :  { %v125_v35 = vpop.permute.xlu0 %124 }
 0x172   :  { %v130_v36 = vmul.f32 %v125_v35, %v101_v10 }
 0x174   :  { %144 = vrot.lane.b32.xlu1 %v130_v36, %s359_s7 }
 0x175   :  { %v127_v37 = vpop.permute.xlu0 %126 }
 0x176   :  { %v131_v38 = vmul.f32 %v278_v8, %v127_v37 }
 0x178   :  { %146 = vrot.lane.b32.xlu1 %v131_v38, %s359_s7 }
 0x1e6   :  { %v145_v39 = vpop.permute.xlu1 %144 }
 0x1e7   :  { %295 = vmatprep.mubr.msk.f32.mxu1 %vm148_vm1, %v145_v39 }
 0x1ea   :  { %v147_v40 = vpop.permute.xlu1 %146 }
 0x1eb   :  { %296 = vmatmul.mubr.msk.f32.vlgmr.msra.gmra.mrb[0].mxu1 %vm148_vm1, %v147_v40 }
 0x2be   :  { %v297_v43 = vpop.f32.mrb[0].mxu1 }
 0x2bf   :  { %v229_v44 = vadd.f32 %v297_v43, %v133_v41  ;;  %v219_v45 = vpop.f32.mrb[1].mxu1 }
 0x2c0   :  { %v228_v46 = vadd.f32 %v219_v45, %v132_v42 }
 0x2c1   :  { %231 = vst.msk [vmem:[#allocation2 + $0x8] sm:$0xff] %vm19_vm0, %v229_v44 }
 0x2c2   :  { %230 = vst.msk [vmem:[#allocation2] sm:$0xff] %vm19_vm0, %v228_v46 }
 0x2c3   :  { %346 = shalt.err (!%p343_p4)
}
 0x2c4   :  { %s347_s16 = scalar_lea.hbm %s447_s3, 256 }
 0x2c5   :  { %p348_p5 = scmp.ne.s32.totalorder %s447_s3, %s347_s16  ;;  %p351_p6 = scmp.lt.u32.totalorder %s347_s16, %s447_s3 }
 0x2c7   :  { %p353_p7 = pnand %p351_p6, %p348_p5 }
 0x2c9   :  { %356 = shalt.err (!%p353_p7)
}
 0x2ca   :  { %s362_s21 = smov 128   ;;  %s363_s22 = smov 8  }
 0x2cb   :  { %243 = dma.vmem_to_hbm [thread:$0]  %s238_s12, 256, %s447_s3, [#allocation3], %s362_s21, %s362_s21, %s363_s22  }
 0x2cc   :  { %357 = dma.done.wait [#allocation3], 256  }
 0x2cd   :  { %358 = vsyncadd [#allocation3], 4294967040 }
 0x2ce   :  { %247 = vsyncpa [#allocation3], 1 }

</bundles_post_ra>
